<compile_context>
chip_gen: v7x
topology: tpu7x:2x2x1
jax: 0.10.0
libtpu: 0.0.40
codegen_flags: <defaults>
</compile_context>

<pallas_src>
import jax
import jax.numpy as jnp
from jax.experimental import pallas as pl
from jax.experimental.pallas import tpu as pltpu


def _round_up(x: int, m: int) -> int:
    return ((x + m - 1) // m) * m


def _decoder_kernel(s_ref, hn_ref, w1a_ref, w1b_ref, b1_ref, w2_ref, b2_ref, o_ref):
    """One batch tile: fused concat + two Linears + numerically stable log_softmax."""
    wdt1 = w1a_ref.dtype
    # Fused concat: cat([s, h]) @ W1  ==  s @ W1[:d]  +  h @ W1[d:]
    h = (
        jnp.dot(s_ref[...].astype(wdt1), w1a_ref[...], preferred_element_type=jnp.float32)
        + jnp.dot(hn_ref[...].astype(wdt1), w1b_ref[...], preferred_element_type=jnp.float32)
        + b1_ref[...]
    )
    logits = (
        jnp.dot(h.astype(w2_ref.dtype), w2_ref[...], preferred_element_type=jnp.float32)
        + b2_ref[...]
    )
    # log_softmax over the (padded) vocab axis; pad columns carry bias -1e30 so
    # exp() underflows to 0 and they do not perturb the logsumexp.
    m = jnp.max(logits, axis=-1, keepdims=True)
    shifted = logits - m
    lse = jnp.log(jnp.sum(jnp.exp(shifted), axis=-1, keepdims=True))
    o_ref[...] = (shifted - lse).astype(o_ref.dtype)


def linear_decoder(s_t, h_new, w1, b1, w2, b2, *, block_b=256, weight_dtype=jnp.float32):
    """Pallas-backed LinearDecoder forward.

    s_t:   (B, hdim/2) f32     h_new: (B, hdim/2) f32
    w1:    (hdim, hdim/2)      b1:    (hdim/2,)
    w2:    (hdim/2, vocab)     b2:    (vocab,)
    returns (B, vocab) f32 log-probabilities.

    Note: the weight padding / splitting below is cheap glue that a real
    deployment would precompute once; it is kept inline so the script is
    self-contained.
    """
    B, d = s_t.shape
    hdim, hid = w1.shape
    hid2, vocab = w2.shape
    assert h_new.shape == (B, d) and hdim == 2 * d and hid2 == hid

    f32 = jnp.float32
    hid_p = _round_up(hid, 128)      # lane-dense hidden
    vocab_p = _round_up(vocab, 128)  # lane-dense output
    tb = min(block_b, _round_up(B, 8))
    B_p = _round_up(B, tb)
    nb = B_p // tb

    # ---- one-time parameter prep: split W1 at the concat seam, zero-pad ----
    w1_p = jnp.zeros((hdim, hid_p), f32).at[:, :hid].set(w1.astype(f32))
    w1a = w1_p[:d].astype(weight_dtype)          # multiplies s_t
    w1b = w1_p[d:].astype(weight_dtype)          # multiplies h_new
    b1_p = jnp.zeros((1, hid_p), f32).at[:, :hid].set(b1.astype(f32))
    w2_p = (
        jnp.zeros((hid_p, vocab_p), f32).at[:hid, :vocab].set(w2.astype(f32))
    ).astype(weight_dtype)
    b2_p = jnp.full((1, vocab_p), -1e30, f32).at[:, :vocab].set(b2.astype(f32))

    # ---- pad batch rows (zeros) so the grid divides evenly ----
    s_p, h_p = s_t, h_new
    if B_p != B:
        s_p = jnp.zeros((B_p, d), s_t.dtype).at[:B].set(s_t)
        h_p = jnp.zeros((B_p, d), h_new.dtype).at[:B].set(h_new)

    # ---- VMEM budget: resident weights + double-buffered act/out tiles ----
    w_itemsize = jnp.dtype(weight_dtype).itemsize
    weight_bytes = (w1a.size + w1b.size + w2_p.size) * w_itemsize + (b1_p.size + b2_p.size) * 4
    tile_bytes = (2 * tb * d + tb * vocab_p) * 4
    vmem_limit = min(64 << 20, max(32 << 20, int(1.5 * (weight_bytes + 2 * tile_bytes))))

    flops = 2 * B_p * hdim * hid_p + 2 * B_p * hid_p * vocab_p
    bytes_accessed = (s_p.size + h_p.size) * 4 + weight_bytes + B_p * vocab_p * 4

    out = pl.pallas_call(
        _decoder_kernel,
        out_shape=jax.ShapeDtypeStruct((B_p, vocab_p), jnp.float32),
        grid=(nb,),
        in_specs=[
            pl.BlockSpec((tb, d), lambda i: (i, 0)),          # s_t tile
            pl.BlockSpec((tb, d), lambda i: (i, 0)),          # h_new tile
            pl.BlockSpec((d, hid_p), lambda i: (0, 0)),       # W1 top half   (resident)
            pl.BlockSpec((d, hid_p), lambda i: (0, 0)),       # W1 bottom half(resident)
            pl.BlockSpec((1, hid_p), lambda i: (0, 0)),       # b1            (resident)
            pl.BlockSpec((hid_p, vocab_p), lambda i: (0, 0)), # W2            (resident)
            pl.BlockSpec((1, vocab_p), lambda i: (0, 0)),     # b2            (resident)
        ],
        out_specs=pl.BlockSpec((tb, vocab_p), lambda i: (i, 0)),
        compiler_params=pltpu.CompilerParams(
            dimension_semantics=("parallel",),
            vmem_limit_bytes=vmem_limit,
        ),
        cost_estimate=pl.CostEstimate(
            flops=flops,
            transcendentals=B_p * vocab_p,
            bytes_accessed=bytes_accessed,
        ),
    )(s_p, h_p, w1a, w1b, b1_p, w2_p, b2_p)

    return out[:B, :vocab]


def _reference(s_t, h_new, w1, b1, w2, b2):
    x = jnp.concatenate([s_t, h_new], axis=-1)
    h = x @ w1 + b1
    logits = h @ w2 + b2
    return jax.nn.log_softmax(logits, axis=-1)


if __name__ == "__main__":
    # Small shapes consistent with the module: hdim=32 -> hidden=16, vocab=128, batch=8.
    B, hdim, vocab = 8, 32, 128
    hid = hdim // 2
    d = hdim // 2

    key = jax.random.PRNGKey(0)
    k_st, k_hn, k_w1, k_b1, k_w2, k_b2 = jax.random.split(key, 6)

    s_t = jax.random.normal(k_st, (B, d), dtype=jnp.float32)
    h_new = jax.random.normal(k_hn, (B, d), dtype=jnp.float32)

    # Deterministic synthetic parameters (uniform, nn.Linear-like range).
    bound1 = 1.0 / (hdim ** 0.5)
    bound2 = 1.0 / (hid ** 0.5)
    w1 = jax.random.uniform(k_w1, (hdim, hid), jnp.float32, -bound1, bound1)
    b1 = jax.random.uniform(k_b1, (hid,), jnp.float32, -bound1, bound1)
    w2 = jax.random.uniform(k_w2, (hid, vocab), jnp.float32, -bound2, bound2)
    b2 = jax.random.uniform(k_b2, (vocab,), jnp.float32, -bound2, bound2)

    out = jax.jit(linear_decoder)(s_t, h_new, w1, b1, w2, b2)
    out = jax.block_until_ready(out)

    ref = _reference(s_t, h_new, w1, b1, w2, b2)
    assert out.shape == (B, vocab)
    assert jnp.allclose(out, ref, atol=1e-5, rtol=1e-5), "mismatch vs reference"

    print("KERNEL_OK")
</pallas_src>

<mosaic_0001>
module attributes {stable_mosaic.version = 11 : i64} {
  func.func @_decoder_kernel(%arg0: i32, %arg1: memref<8x16xf32, #tpu.memory_space<vmem>>, %arg2: memref<8x16xf32, #tpu.memory_space<vmem>>, %arg3: memref<16x128xf32, #tpu.memory_space<vmem>>, %arg4: memref<16x128xf32, #tpu.memory_space<vmem>>, %arg5: memref<1x128xf32, #tpu.memory_space<vmem>>, %arg6: memref<128x128xf32, #tpu.memory_space<vmem>>, %arg7: memref<1x128xf32, #tpu.memory_space<vmem>>, %arg8: memref<8x128xf32, #tpu.memory_space<vmem>>) attributes {dimension_semantics = [#tpu.dimension_semantics<parallel>], iteration_bounds = array<i64: 1>, scalar_prefetch = 0 : i64, scratch_operands = 0 : i64, tpu.core_type = #tpu.core_type<tc>, window_params = [{transform_indices = @transform_0, window_bounds = array<i64: 8, 16>}, {transform_indices = @transform_1, window_bounds = array<i64: 8, 16>}, {pipeline_mode = #tpu.pipeline_mode<synchronous>, transform_indices = @transform_2, window_bounds = array<i64: 16, 128>}, {pipeline_mode = #tpu.pipeline_mode<synchronous>, transform_indices = @transform_3, window_bounds = array<i64: 16, 128>}, {pipeline_mode = #tpu.pipeline_mode<synchronous>, transform_indices = @transform_4, window_bounds = array<i64: 1, 128>}, {pipeline_mode = #tpu.pipeline_mode<synchronous>, transform_indices = @transform_5, window_bounds = array<i64: 128, 128>}, {pipeline_mode = #tpu.pipeline_mode<synchronous>, transform_indices = @transform_6, window_bounds = array<i64: 1, 128>}, {transform_indices = @transform_7, window_bounds = array<i64: 8, 128>}]} {
    %c0 = arith.constant 0 : index
    %c0_0 = arith.constant 0 : index
    %0 = vector.load %arg1[%c0, %c0_0] : memref<8x16xf32, #tpu.memory_space<vmem>>, vector<8x16xf32>
    %c0_1 = arith.constant 0 : index
    %c0_2 = arith.constant 0 : index
    %1 = vector.load %arg3[%c0_1, %c0_2] : memref<16x128xf32, #tpu.memory_space<vmem>>, vector<16x128xf32>
    %cst = arith.constant dense<0.000000e+00> : vector<8x128xf32>
    %2 = tpu.matmul %0, %1, %cst {dimension_numbers = #tpu.dot_dimension_numbers<[1], [0], [0], [1], [0, 0, 1, 1], [], []>} : vector<8x16xf32>, vector<16x128xf32>, vector<8x128xf32> -> vector<8x128xf32>
    %c0_3 = arith.constant 0 : index
    %c0_4 = arith.constant 0 : index
    %3 = vector.load %arg2[%c0_3, %c0_4] : memref<8x16xf32, #tpu.memory_space<vmem>>, vector<8x16xf32>
    %c0_5 = arith.constant 0 : index
    %c0_6 = arith.constant 0 : index
    %4 = vector.load %arg4[%c0_5, %c0_6] : memref<16x128xf32, #tpu.memory_space<vmem>>, vector<16x128xf32>
    %cst_7 = arith.constant dense<0.000000e+00> : vector<8x128xf32>
    %5 = tpu.matmul %3, %4, %cst_7 {dimension_numbers = #tpu.dot_dimension_numbers<[1], [0], [0], [1], [0, 0, 1, 1], [], []>} : vector<8x16xf32>, vector<16x128xf32>, vector<8x128xf32> -> vector<8x128xf32>
    %6 = arith.addf %2, %5 : vector<8x128xf32>
    %c0_8 = arith.constant 0 : index
    %c0_9 = arith.constant 0 : index
    %7 = vector.load %arg5[%c0_8, %c0_9] : memref<1x128xf32, #tpu.memory_space<vmem>>, vector<1x128xf32>
    %8 = vector.broadcast %7 : vector<1x128xf32> to vector<8x128xf32>
    %9 = arith.addf %6, %8 : vector<8x128xf32>
    %c0_10 = arith.constant 0 : index
    %c0_11 = arith.constant 0 : index
    %10 = vector.load %arg6[%c0_10, %c0_11] : memref<128x128xf32, #tpu.memory_space<vmem>>, vector<128x128xf32>
    %cst_12 = arith.constant dense<0.000000e+00> : vector<8x128xf32>
    %11 = tpu.matmul %9, %10, %cst_12 {dimension_numbers = #tpu.dot_dimension_numbers<[1], [0], [0], [1], [0, 0, 1, 1], [], []>} : vector<8x128xf32>, vector<128x128xf32>, vector<8x128xf32> -> vector<8x128xf32>
    %c0_13 = arith.constant 0 : index
    %c0_14 = arith.constant 0 : index
    %12 = vector.load %arg7[%c0_13, %c0_14] : memref<1x128xf32, #tpu.memory_space<vmem>>, vector<1x128xf32>
    %13 = vector.broadcast %12 : vector<1x128xf32> to vector<8x128xf32>
    %14 = arith.addf %11, %13 : vector<8x128xf32>
    %cst_15 = arith.constant dense<0xFF800000> : vector<8xf32>
    %15 = vector.multi_reduction <maximumf>, %14, %cst_15 [1] : vector<8x128xf32> to vector<8xf32>
    %16 = vector.shape_cast %15 : vector<8xf32> to vector<8x1xf32>
    %17 = vector.broadcast %16 : vector<8x1xf32> to vector<8x128xf32>
    %18 = arith.subf %14, %17 : vector<8x128xf32>
    %19 = math.exp %18 : vector<8x128xf32>
    %cst_16 = arith.constant dense<0.000000e+00> : vector<8xf32>
    %20 = vector.multi_reduction <add>, %19, %cst_16 [1] : vector<8x128xf32> to vector<8xf32>
    %21 = vector.shape_cast %20 : vector<8xf32> to vector<8x1xf32>
    %22 = math.log %21 : vector<8x1xf32>
    %23 = vector.broadcast %22 : vector<8x1xf32> to vector<8x128xf32>
    %24 = arith.subf %18, %23 : vector<8x128xf32>
    %c0_17 = arith.constant 0 : index
    %c0_18 = arith.constant 0 : index
    %25 = vector.load %arg8[%c0_17, %c0_18] : memref<8x128xf32, #tpu.memory_space<vmem>>, vector<8x128xf32>
    tpu.vector_store %arg8[%c0_17, %c0_18], %24 {strides = array<i32>} : memref<8x128xf32, #tpu.memory_space<vmem>>, vector<8x128xf32>,
    return
  }
  func.func @transform_0(%arg0: i32) -> (i32, i32) {
    %c0_i32 = arith.constant 0 : i32
    %c0_i32_0 = arith.constant 0 : i32
    return %arg0, %c0_i32 : i32, i32
  }
  func.func @transform_1(%arg0: i32) -> (i32, i32) {
    %c0_i32 = arith.constant 0 : i32
    %c0_i32_0 = arith.constant 0 : i32
    return %arg0, %c0_i32 : i32, i32
  }
  func.func @transform_2(%arg0: i32) -> (i32, i32) {
    %c0_i32 = arith.constant 0 : i32
    %c0_i32_0 = arith.constant 0 : i32
    %c0_i32_1 = arith.constant 0 : i32
    return %c0_i32, %c0_i32_0 : i32, i32
  }
  func.func @transform_3(%arg0: i32) -> (i32, i32) {
    %c0_i32 = arith.constant 0 : i32
    %c0_i32_0 = arith.constant 0 : i32
    %c0_i32_1 = arith.constant 0 : i32
    return %c0_i32, %c0_i32_0 : i32, i32
  }
  func.func @transform_4(%arg0: i32) -> (i32, i32) {
    %c0_i32 = arith.constant 0 : i32
    %c0_i32_0 = arith.constant 0 : i32
    %c0_i32_1 = arith.constant 0 : i32
    return %c0_i32, %c0_i32_0 : i32, i32
  }
  func.func @transform_5(%arg0: i32) -> (i32, i32) {
    %c0_i32 = arith.constant 0 : i32
    %c0_i32_0 = arith.constant 0 : i32
    %c0_i32_1 = arith.constant 0 : i32
    return %c0_i32, %c0_i32_0 : i32, i32
  }
  func.func @transform_6(%arg0: i32) -> (i32, i32) {
    %c0_i32 = arith.constant 0 : i32
    %c0_i32_0 = arith.constant 0 : i32
    %c0_i32_1 = arith.constant 0 : i32
    return %c0_i32, %c0_i32_0 : i32, i32
  }
  func.func @transform_7(%arg0: i32) -> (i32, i32) {
    %c0_i32 = arith.constant 0 : i32
    %c0_i32_0 = arith.constant 0 : i32
    return %arg0, %c0_i32 : i32, i32
  }
}

</mosaic_0001>

<bundles_post_ra>
// kernel: linear_decoder.1
= control target key start
LH: loop header
LB: loop body
LE: loop exit
PB: predicated region body
PF: predicated region fallthrough
CT: control target
= control target key end

     0   :  { %v444_v2 = vmov 0.0|0.0   ;;  %vm445_vm0 = vmmov 0   ;;  %v446_v4 = vmov 0.0   ;;  %vm33_vm1 = vcmask 130048   ;;  %s577_s0 = inlined_call_operand.vmem [shape: f32[8,16], index: 0, kind: input, shape index: {}]   ;;  %s578_s1 = inlined_call_operand.vmem [shape: f32[8,16], index: 1, kind: input, shape index: {}]   ;;  %s579_s2 = inlined_call_operand.vmem [shape: f32[16,128], index: 2, kind: input, shape index: {}]   ;;  %s580_s3 = inlined_call_operand.vmem [shape: f32[16,128], index: 3, kind: input, shape index: {}]   ;;  %s581_s4 = inlined_call_operand.vmem [shape: f32[1,128], index: 4, kind: input, shape index: {}]   ;;  %s582_s5 = inlined_call_operand.vmem [shape: f32[128,128], index: 5, kind: input, shape index: {}]   ;;  %s583_s6 = inlined_call_operand.vmem [shape: f32[1,128], index: 6, kind: input, shape index: {}]   ;;  %s584_s7 = inlined_call_operand.hbm [shape: f32[8,128], index: 7, kind: output, shape index: {}]  }
   0x1   :  { %v31_v0 = vld [vmem:[%s580_s3] sm:$0xff]  ;;  %v32_v1 = vld [vmem:[%s580_s3 + $0x8] sm:$0xff]  ;;  %382 = vmatprep.subr.bf16.mxu1 %v444_v2  ;;  %337 = vmatprep.mubr.msk.f32.mxu1 %vm445_vm0, %v446_v4  ;;  %v190_v9 = vld [vmem:[%s582_s5 + $0x10] sm:$0xff] }
   0x2   :  { %v383_v3 = vpack.c.bf16 %v32_v1, %v31_v0  ;;  %v28_v5 = vld [vmem:[%s579_s2] sm:$0xff]  ;;  %v29_v6 = vld [vmem:[%s579_s2 + $0x8] sm:$0xff]  ;;  %388 = vmatprep.subr.bf16.mxu0 %v444_v2  ;;  %379 = vmatprep.mubr.msk.f32.mxu0 %vm445_vm0, %v446_v4  ;;  %v191_v13 = vld [vmem:[%s582_s5 + $0x18] sm:$0xff] }
   0x3   :  { %v188_v7 = vld [vmem:[%s582_s5] sm:$0xff]  ;;  %v189_v8 = vld [vmem:[%s582_s5 + $0x8] sm:$0xff]  ;;  %v386_v11 = vpack.c.bf16 %v29_v6, %v28_v5  ;;  %v392_v14 = vpack.c.bf16 %v191_v13, %v190_v9 }
   0x4   :  { %384 = vmatpush3.bf16.msra.mxu1 %v383_v3  ;;  %v30_v10 = vld [vmem:[%s578_s1] sm:$0xff]  ;;  %v389_v12 = vpack.c.bf16 %v189_v8, %v188_v7  ;;  %v193_v16 = vld [vmem:[%s582_s5 + $0x28] sm:$0xff] }
   0x5   :  { %385 = vmatprep.subr.bf16.mxu1 %v444_v2  ;;  %v192_v15 = vld [vmem:[%s582_s5 + $0x20] sm:$0xff] }
   0x6   :  { %390 = vmatpush3.bf16.msra.mxu0 %v389_v12 }
   0x7   :  { %338 = vmatmul.mubr.msk.f32.vlgmr.msra.gmra.mrb[0].mxu1 %vm33_vm1, %v30_v10  ;;  %391 = vmatprep.subr.bf16.mxu0 %v444_v2 }
   0x8   :  { %12 = vsyncpa [#allocation3], 0  ;;  %387 = vmatpush3.bf16.msra.mxu1 %v386_v11  ;;  %344 = vmatprep.mubr.msk.f32.mxu1 %vm445_vm0, %v446_v4  ;;  %v27_v17 = vld [vmem:[%s577_s0] sm:$0xff]  ;;  %v395_v18 = vpack.c.bf16 %v193_v16, %v192_v15  ;;  %v194_v19 = vld [vmem:[%s582_s5 + $0x30] sm:$0xff] }
   0x9   :  { %v195_v20 = vld [vmem:[%s582_s5 + $0x38] sm:$0xff]  ;;  %v196_v22 = vld [vmem:[%s582_s5 + $0x40] sm:$0xff]  ;;  %v197_v23 = vld [vmem:[%s582_s5 + $0x48] sm:$0xff] }
   0xa   :  { %393 = vmatpush3.bf16.msra.mxu0 %v392_v14  ;;  %v398_v21 = vpack.c.bf16 %v195_v20, %v194_v19  ;;  %v401_v24 = vpack.c.bf16 %v197_v23, %v196_v22  ;;  %v198_v25 = vld [vmem:[%s582_s5 + $0x50] sm:$0xff]  ;;  %v199_v26 = vld [vmem:[%s582_s5 + $0x58] sm:$0xff]  ;;  %v200_v28 = vld [vmem:[%s582_s5 + $0x60] sm:$0xff] }
   0xb   :  { %345 = vmatmul.mubr.msk.f32.vlgmr.msra.gmra.mrb[2].mxu1 %vm33_vm1, %v27_v17  ;;  %394 = vmatprep.subr.bf16.mxu0 %v444_v2  ;;  %v404_v27 = vpack.c.bf16 %v199_v26, %v198_v25  ;;  %v201_v29 = vld [vmem:[%s582_s5 + $0x68] sm:$0xff]  ;;  %v202_v31 = vld [vmem:[%s582_s5 + $0x70] sm:$0xff]  ;;  %v203_v32 = vld [vmem:[%s582_s5 + $0x78] sm:$0xff] }
   0xc   :  { %v407_v30 = vpack.c.bf16 %v201_v29, %v200_v28  ;;  %v410_v33 = vpack.c.bf16 %v203_v32, %v202_v31  ;;  %v308_v37 = vld [vmem:[%s581_s4] ss:$0 sm:$0xff]  ;;  %s447_s4 = smov [#allocation2]  }
   0xd   :  { %v309_v41 = vld [vmem:[%s583_s6] ss:$0 sm:$0xff]  ;;  %s298_s5 = sshll.u32 %s447_s4, 4  ;;  %s299_s5 = int_to_ptr.vmem [resolvable:$true] %s298_s5 }
   0xe   :  { %396 = vmatpush3.bf16.msra.mxu0 %v395_v18  ;;  %s420_s6 = scalar_lea.vmem %s299_s5, 128  ;;  %p425_p1 = scmp.lt.s32.totalorder %s299_s5, %s299_s5 }
   0xf   :  { %397 = vmatprep.subr.bf16.mxu0 %v444_v2  ;;  %p421_p0 = scmp.ne.s32.totalorder %s299_s5, %s420_s6  ;;  %p426_p2 = scmp.lt.s32.totalorder %s420_s6, %s420_s6 }
  0x11   :  { %p427_p3 = por %p426_p2, %p425_p1 }
  0x12   :  { %399 = vmatpush3.bf16.msra.mxu0 %v398_v21 }
  0x13   :  { %400 = vmatprep.subr.bf16.mxu0 %v444_v2  ;;  %p428_p4 = pnand %p427_p3, %p421_p0 }
  0x16   :  { %402 = vmatpush3.bf16.msra.mxu0 %v401_v24 }
  0x17   :  { %403 = vmatprep.subr.bf16.mxu0 %v444_v2 }
  0x1a   :  { %405 = vmatpush3.bf16.msra.mxu0 %v404_v27 }
  0x1b   :  { %406 = vmatprep.subr.bf16.mxu0 %v444_v2 }
  0x1e   :  { %408 = vmatpush3.bf16.msra.mxu0 %v407_v30 }
  0x1f   :  { %409 = vmatprep.subr.bf16.mxu0 %v444_v2 }
  0x22   :  { %411 = vmatpush3.bf16.msra.mxu0 %v410_v33 }
  0xda   :  { %v103_v34 = vpop.f32.mrb[0].mxu1 }
  0xdb   :  { %v339_v35 = vpop.f32.mrb[1].mxu1 }
  0xde   :  { %v176_v36 = vpop.f32.mrb[2].mxu1 }
  0xdf   :  { %v177_v38 = vadd.f32 %v176_v36, %v103_v34  ;;  %v346_v39 = vpop.f32.mrb[3].mxu1 }
  0xe1   :  { %v187_v40 = vadd.f32 %v308_v37, %v177_v38 }
  0xe3   :  { %380 = vmatmul.mubr.f32.vlgmr.msra.gmra.mrb[0].mxu0 %v187_v40 }
 0x1b6   :  { %v277_v42 = vpop.f32.mrb[0].mxu0 }
 0x1b7   :  { %v278_v43 = vadd.f32 %v309_v41, %v277_v42  ;;  %v381_v44 = vpop.f32.mrb[1].mxu0 }
 0x1b9   :  { %281 = vmax.xlane.f32.xlu0 %v278_v43 }
 0x246   :  { %v282_v45 = vpop.xlane.xlu0 %281 }
 0x247   :  { %v283_v46 = vsub.f32 %v278_v43, %v282_v45 }
 0x249   :  { %v284_v47 = vmul.f32 1.442695, %v283_v46 }
 0x24b   :  { %416 = vpow2.f32 %v284_v47 }
 0x255   :  { %v417_v48 = vpop.eup %416 }
 0x256   :  { %286 = vadd.xlane.f32.xlu0 %v417_v48 }
 0x2e3   :  { %v287_v49 = vpop.xlane.xlu0 %286 }
 0x2e4   :  { %418 = vlog2.f32 %v287_v49 }
 0x2ee   :  { %v419_v50 = vpop.eup %418 }
 0x2ef   :  { %v289_v51 = vmul.f32 0.6931472, %v419_v50 }
 0x2f1   :  { %v290_v52 = vsub.f32 %v283_v46, %v289_v51 }
 0x2f3   :  { %291 = vst [vmem:[#allocation2] sm:$0xff] %v290_v52 }
 0x2f4   :  { %431 = shalt.err (!%p428_p4)
}
 0x2f5   :  { %s432_s21 = scalar_lea.hbm %s584_s7, 128 }
 0x2f6   :  { %p433_p5 = scmp.ne.s32.totalorder %s584_s7, %s432_s21  ;;  %p436_p6 = scmp.lt.u32.totalorder %s432_s21, %s584_s7 }
 0x2f8   :  { %p438_p7 = pnand %p436_p6, %p433_p5 }
 0x2fa   :  { %441 = shalt.err (!%p438_p7)
}
 0x2fb   :  { %301 = dma.vmem_to_hbm [thread:$0]  %s299_s5, 128, %s584_s7, [#allocation3]  }
 0x2fc   :  { %442 = dma.done.wait [#allocation3], 128  }
 0x2fd   :  { %443 = vsyncadd [#allocation3], 4294967168 }
 0x2fe   :  { %305 = vsyncpa [#allocation3], 1 }

</bundles_post_ra>
